<compile_context>
chip_gen: v5e
topology: v5e:2x2
jax: 0.10.0
libtpu: 0.0.40
codegen_flags: <defaults>
</compile_context>

<pallas_src>
import functools

import jax
import jax.numpy as jnp
from jax import lax
from jax.experimental import pallas as pl
from jax.experimental.pallas import tpu as pltpu


def _round_up(x, m):
    return (x + m - 1) // m * m


def _conv_bn_relu_kernel(patches_ref, w_ref, scale_ref, bias_ref, o_ref, acc_ref):
    """Fused im2col-matmul + BN(scale,bias) + ReLU.

    patches_ref : (TM, TK)       bf16
    w_ref       : (TK, N_pad)    bf16
    scale_ref   : (1, N_pad)     f32   (gamma / sqrt(var + eps))
    bias_ref    : (1, N_pad)     f32   (beta + (conv_bias - mean) * scale)
    o_ref       : (TM, N_pad)    f32
    acc_ref     : (TM, N_pad)    f32   VMEM scratch accumulator
    """
    @pl.when(pl.program_id(1) == 0)
    def _init():
        acc_ref[...] = jnp.zeros_like(acc_ref)

    acc_ref[...] += jnp.dot(patches_ref[...], w_ref[...],
                            preferred_element_type=jnp.float32)

    # Epilogue only at the last K step: scale/bias broadcast + ReLU stay out
    # of the inner reduction loop (free under the MXU-bound steady state).
    @pl.when(pl.program_id(1) == pl.num_programs(1) - 1)
    def _finalize():
        y = acc_ref[...] * scale_ref[...] + bias_ref[...]
        o_ref[...] = jnp.maximum(y, 0.0).astype(o_ref.dtype)


def _im2col(x, ksize, stride, padding):
    """x: (N, C, H, W) -> patches (N*OH*OW, C*KH*KW), plus (N, OH, OW)."""
    n, c, h, w = x.shape
    oh = (h + 2 * padding - ksize) // stride + 1
    ow = (w + 2 * padding - ksize) // stride + 1
    xp = jnp.pad(x, ((0, 0), (0, 0), (padding, padding), (padding, padding)))
    cols = []
    for kh in range(ksize):
        for kw in range(ksize):
            cols.append(
                xp[:, :, kh:kh + stride * oh:stride, kw:kw + stride * ow:stride]
            )  # (N, C, OH, OW)
    # (KH*KW, N, C, OH, OW) -> (N, OH, OW, C, KH*KW)
    patches = jnp.stack(cols, axis=0)
    patches = jnp.transpose(patches, (1, 3, 4, 2, 0))
    patches = patches.reshape(n * oh * ow, c * ksize * ksize)
    return patches, (n, oh, ow)


@functools.partial(jax.jit, static_argnames=("ksize", "stride", "padding"))
def conv_block_forward(x, conv_w, conv_b, bn_gamma, bn_beta,
                       bn_mean, bn_var, *, ksize, stride, padding,
                       eps=1e-5):
    """ConvBlock forward: Conv2d -> BatchNorm2d(eval) -> ReLU.  NCHW in/out."""
    outch = conv_w.shape[0]
    patches, (n, oh, ow) = _im2col(x.astype(jnp.float32), ksize, stride, padding)
    m, k = patches.shape

    # ----- tiling / padding choices ---------------------------------------
    # Lane-dense output: pad OUTCH up to a multiple of 128 lanes.
    n_pad = _round_up(outch, 128)
    # M tile: 512 rows works on all generations (fits comfortably even on
    # v7x's 64 MiB VMEM, amortizes the ~0.35 us per-grid-step overhead).
    tm = min(512, _round_up(m, 8))
    m_pad = _round_up(m, tm)
    # K tile: single K block when K is small (common for conv layers);
    # otherwise 1024 and reduce over a trailing "arbitrary" grid axis.
    k_base = _round_up(k, 16)          # bf16 sublane packing
    tk = k_base if k_base <= 1024 else 1024
    k_pad = _round_up(k, tk)

    m_tiles = m_pad // tm
    k_tiles = k_pad // tk

    # ----- operand prep ----------------------------------------------------
    # bf16 operands halve HBM/DMA traffic and run the MXU at full bf16 rate;
    # accumulation stays in f32 inside the kernel.
    patches = jnp.pad(patches, ((0, m_pad - m), (0, k_pad - k)))
    patches = patches.astype(jnp.bfloat16)

    # weight (OUTCH, C, KH, KW) -> (K, OUTCH_pad), matching patch column order.
    w2d = conv_w.reshape(outch, k).T.astype(jnp.float32)
    w2d = jnp.pad(w2d, ((0, k_pad - k), (0, n_pad - outch))).astype(jnp.bfloat16)

    # Fold BN (eval-mode) + conv bias into per-channel scale/bias (f32).
    scale = (bn_gamma / jnp.sqrt(bn_var + eps)).astype(jnp.float32)
    bias = (bn_beta + (conv_b - bn_mean) * scale).astype(jnp.float32)
    scale2d = jnp.pad(scale.reshape(1, outch), ((0, 0), (0, n_pad - outch)))
    bias2d = jnp.pad(bias.reshape(1, outch), ((0, 0), (0, n_pad - outch)))

    # Explicit VMEM budget: double-buffered input/output tiles + accumulator.
    # Kept well under v7x's 64 MiB physical VMEM.
    tile_bytes = (2 * tm * tk * 2          # patches tile (bf16, 2 bufs)
                  + 2 * tk * n_pad * 2     # weight tile  (bf16, 2 bufs)
                  + 2 * tm * n_pad * 4     # output tile  (f32, 2 bufs)
                  + tm * n_pad * 4         # accumulator scratch
                  + 4 * n_pad * 4)         # scale/bias
    vmem_limit = int(min(max(32 * 1024 * 1024, 2 * tile_bytes),
                         48 * 1024 * 1024))

    out2d = pl.pallas_call(
        _conv_bn_relu_kernel,
        out_shape=jax.ShapeDtypeStruct((m_pad, n_pad), jnp.float32),
        grid_spec=pltpu.PrefetchScalarGridSpec(
            num_scalar_prefetch=0,
            grid=(m_tiles, k_tiles),
            in_specs=[
                pl.BlockSpec((tm, tk), lambda i, kk: (i, kk)),
                pl.BlockSpec((tk, n_pad), lambda i, kk: (kk, 0)),
                pl.BlockSpec((1, n_pad), lambda i, kk: (0, 0)),
                pl.BlockSpec((1, n_pad), lambda i, kk: (0, 0)),
            ],
            out_specs=pl.BlockSpec((tm, n_pad), lambda i, kk: (i, 0)),
            scratch_shapes=[pltpu.VMEM((tm, n_pad), jnp.float32)],
        ),
        compiler_params=pltpu.CompilerParams(
            dimension_semantics=("parallel", "arbitrary"),
            vmem_limit_bytes=vmem_limit),
    )(patches, w2d, scale2d, bias2d)

    # Slice off padding; reshape NHWC -> NCHW to keep the PyTorch interface.
    # TODO(synk): in a full pipeline keep NHWC internally and fold this
    #             transpose into the consumer to save an HBM round-trip.
    out = out2d[:m, :outch].reshape(n, oh, ow, outch)
    out = jnp.transpose(out, (0, 3, 1, 2))
    return out.astype(x.dtype)


if __name__ == "__main__":
    # Small deterministic config: ConvBlock(inch=4, outch=8, ksize=3, stride=1, padding=1)
    inch, outch, ksize, stride, padding = 4, 8, 3, 1, 1
    N, H, W = 2, 16, 16

    key = jax.random.PRNGKey(0)
    kx, kw, kb = jax.random.split(key, 3)

    x = jax.random.normal(kx, (N, inch, H, W), dtype=jnp.float32)
    conv_w = jax.random.normal(kw, (outch, inch, ksize, ksize),
                               dtype=jnp.float32) * 0.1
    conv_b = jax.random.normal(kb, (outch,), dtype=jnp.float32) * 0.1

    # Deterministic BatchNorm parameters (eval-mode running stats).
    bn_gamma = jnp.linspace(0.5, 1.5, outch, dtype=jnp.float32)
    bn_beta = jnp.linspace(-0.1, 0.1, outch, dtype=jnp.float32)
    bn_mean = jnp.linspace(-0.05, 0.05, outch, dtype=jnp.float32)
    bn_var = jnp.linspace(0.9, 1.1, outch, dtype=jnp.float32)

    out = conv_block_forward(
        x, conv_w, conv_b, bn_gamma, bn_beta, bn_mean, bn_var,
        ksize=ksize, stride=stride, padding=padding)
    jax.block_until_ready(out)

    # Reference check against pure-JAX conv + BN + ReLU on bf16-rounded
    # operands (the kernel feeds the MXU bf16 values, accumulates in f32).
    x_bf = x.astype(jnp.bfloat16).astype(jnp.float32)
    w_bf = conv_w.astype(jnp.bfloat16).astype(jnp.float32)
    ref = lax.conv_general_dilated(
        x_bf, w_bf, window_strides=(stride, stride),
        padding=[(padding, padding), (padding, padding)],
        dimension_numbers=("NCHW", "OIHW", "NCHW"))
    ref = ref + conv_b.reshape(1, outch, 1, 1)
    ref = (ref - bn_mean.reshape(1, outch, 1, 1)) / jnp.sqrt(
        bn_var.reshape(1, outch, 1, 1) + 1e-5)
    ref = ref * bn_gamma.reshape(1, outch, 1, 1) + bn_beta.reshape(1, outch, 1, 1)
    ref = jnp.maximum(ref, 0.0)

    assert out.shape == (N, outch, H, W), out.shape
    assert jnp.allclose(out, ref, atol=2e-3, rtol=2e-3), "mismatch vs reference"
    print("KERNEL_OK")
</pallas_src>

<mosaic_0001>
module attributes {stable_mosaic.version = 11 : i64} {
  func.func @_conv_bn_relu_kernel(%arg0: i32, %arg1: i32, %arg2: memref<512x48xbf16, #tpu.memory_space<vmem>>, %arg3: memref<48x128xbf16, #tpu.memory_space<vmem>>, %arg4: memref<1x128xf32, #tpu.memory_space<vmem>>, %arg5: memref<1x128xf32, #tpu.memory_space<vmem>>, %arg6: memref<512x128xf32, #tpu.memory_space<vmem>>, %arg7: memref<512x128xf32, #tpu.memory_space<vmem>>) attributes {dimension_semantics = [#tpu.dimension_semantics<parallel>, #tpu.dimension_semantics<arbitrary>], iteration_bounds = array<i64: 1, 1>, scalar_prefetch = 0 : i64, scratch_operands = 1 : i64, tpu.core_type = #tpu.core_type<tc>, window_params = [{transform_indices = @transform_0, window_bounds = array<i64: 512, 48>}, {transform_indices = @transform_1, window_bounds = array<i64: 48, 128>}, {pipeline_mode = #tpu.pipeline_mode<synchronous>, transform_indices = @transform_2, window_bounds = array<i64: 1, 128>}, {pipeline_mode = #tpu.pipeline_mode<synchronous>, transform_indices = @transform_3, window_bounds = array<i64: 1, 128>}, {transform_indices = @transform_4, window_bounds = array<i64: 512, 128>}]} {
    %c0_i32 = arith.constant 0 : i32
    %0 = arith.cmpi eq, %arg1, %c0_i32 : i32
    %1 = arith.extui %0 : i1 to i32
    %c0_i32_0 = arith.constant 0 : i32
    %2 = arith.cmpi ne, %1, %c0_i32_0 : i32
    scf.if %2 {
      %cst_10 = arith.constant 0.000000e+00 : f32
      %12 = vector.broadcast %cst_10 : f32 to vector<512x128xf32>
      %c0_11 = arith.constant 0 : index
      %c0_12 = arith.constant 0 : index
      %13 = vector.load %arg7[%c0_11, %c0_12] : memref<512x128xf32, #tpu.memory_space<vmem>>, vector<512x128xf32>
      tpu.vector_store %arg7[%c0_11, %c0_12], %12 {strides = array<i32>} : memref<512x128xf32, #tpu.memory_space<vmem>>, vector<512x128xf32>,
    } else {
    }
    %c0 = arith.constant 0 : index
    %c0_1 = arith.constant 0 : index
    %3 = vector.load %arg7[%c0, %c0_1] : memref<512x128xf32, #tpu.memory_space<vmem>>, vector<512x128xf32>
    %c0_2 = arith.constant 0 : index
    %c0_3 = arith.constant 0 : index
    %4 = vector.load %arg2[%c0_2, %c0_3] : memref<512x48xbf16, #tpu.memory_space<vmem>>, vector<512x48xbf16>
    %c0_4 = arith.constant 0 : index
    %c0_5 = arith.constant 0 : index
    %5 = vector.load %arg3[%c0_4, %c0_5] : memref<48x128xbf16, #tpu.memory_space<vmem>>, vector<48x128xbf16>
    %cst = arith.constant dense<0.000000e+00> : vector<512x128xf32>
    %6 = tpu.matmul %4, %5, %cst {dimension_numbers = #tpu.dot_dimension_numbers<[1], [0], [0], [1], [0, 0, 1, 1], [], []>} : vector<512x48xbf16>, vector<48x128xbf16>, vector<512x128xf32> -> vector<512x128xf32>
    %7 = arith.addf %3, %6 : vector<512x128xf32>
    %c0_6 = arith.constant 0 : index
    %c0_7 = arith.constant 0 : index
    %8 = vector.load %arg7[%c0_6, %c0_7] : memref<512x128xf32, #tpu.memory_space<vmem>>, vector<512x128xf32>
    tpu.vector_store %arg7[%c0_6, %c0_7], %7 {strides = array<i32>} : memref<512x128xf32, #tpu.memory_space<vmem>>, vector<512x128xf32>,
    %c0_i32_8 = arith.constant 0 : i32
    %9 = arith.cmpi eq, %arg1, %c0_i32_8 : i32
    %10 = arith.extui %9 : i1 to i32
    %c0_i32_9 = arith.constant 0 : i32
    %11 = arith.cmpi ne, %10, %c0_i32_9 : i32
    scf.if %11 {
      %c0_10 = arith.constant 0 : index
      %c0_11 = arith.constant 0 : index
      %12 = vector.load %arg7[%c0_10, %c0_11] : memref<512x128xf32, #tpu.memory_space<vmem>>, vector<512x128xf32>
      %c0_12 = arith.constant 0 : index
      %c0_13 = arith.constant 0 : index
      %13 = vector.load %arg4[%c0_12, %c0_13] : memref<1x128xf32, #tpu.memory_space<vmem>>, vector<1x128xf32>
      %14 = vector.broadcast %13 : vector<1x128xf32> to vector<512x128xf32>
      %15 = arith.mulf %12, %14 : vector<512x128xf32>
      %c0_14 = arith.constant 0 : index
      %c0_15 = arith.constant 0 : index
      %16 = vector.load %arg5[%c0_14, %c0_15] : memref<1x128xf32, #tpu.memory_space<vmem>>, vector<1x128xf32>
      %17 = vector.broadcast %16 : vector<1x128xf32> to vector<512x128xf32>
      %18 = arith.addf %15, %17 : vector<512x128xf32>
      %cst_16 = arith.constant 0.000000e+00 : f32
      %19 = vector.broadcast %cst_16 : f32 to vector<512x128xf32>
      %20 = arith.maximumf %18, %19 : vector<512x128xf32>
      %c0_17 = arith.constant 0 : index
      %c0_18 = arith.constant 0 : index
      %21 = vector.load %arg6[%c0_17, %c0_18] : memref<512x128xf32, #tpu.memory_space<vmem>>, vector<512x128xf32>
      tpu.vector_store %arg6[%c0_17, %c0_18], %20 {strides = array<i32>} : memref<512x128xf32, #tpu.memory_space<vmem>>, vector<512x128xf32>,
    } else {
    }
    return
  }
  func.func @transform_0(%arg0: i32, %arg1: i32) -> (i32, i32) {
    %c0_i32 = arith.constant 0 : i32
    return %arg0, %arg1 : i32, i32
  }
  func.func @transform_1(%arg0: i32, %arg1: i32) -> (i32, i32) {
    %c0_i32 = arith.constant 0 : i32
    %c0_i32_0 = arith.constant 0 : i32
    return %arg1, %c0_i32 : i32, i32
  }
  func.func @transform_2(%arg0: i32, %arg1: i32) -> (i32, i32) {
    %c0_i32 = arith.constant 0 : i32
    %c0_i32_0 = arith.constant 0 : i32
    %c0_i32_1 = arith.constant 0 : i32
    return %c0_i32, %c0_i32_0 : i32, i32
  }
  func.func @transform_3(%arg0: i32, %arg1: i32) -> (i32, i32) {
    %c0_i32 = arith.constant 0 : i32
    %c0_i32_0 = arith.constant 0 : i32
    %c0_i32_1 = arith.constant 0 : i32
    return %c0_i32, %c0_i32_0 : i32, i32
  }
  func.func @transform_4(%arg0: i32, %arg1: i32) -> (i32, i32) {
    %c0_i32 = arith.constant 0 : i32
    %c0_i32_0 = arith.constant 0 : i32
    return %arg0, %c0_i32 : i32, i32
  }
}

</mosaic_0001>

<bundles_post_ra>
// kernel: conv_block_forward.1
= control target key start
LH: loop header
LB: loop body
LE: loop exit
PB: predicated region body
PF: predicated region fallthrough
CT: control target
= control target key end

     0   :  { %vm398_vm0 = vcmask 392192   ;;  %s1837_s1 = inlined_call_operand.vmem [shape: bf16[48,128], index: 1, kind: input, shape index: {}]   ;;  %s1838_s2 = inlined_call_operand.vmem [shape: f32[1,128], index: 2, kind: input, shape index: {}]   ;;  %s1839_s3 = inlined_call_operand.vmem [shape: f32[1,128], index: 3, kind: input, shape index: {}]   ;;  %s1840_s0 = inlined_call_operand.vmem [shape: bf16[512,48], index: 0, kind: input, shape index: {}]   ;;  %s1841_s4 = inlined_call_operand.vmem [shape: f32[512,128], index: 4, kind: output, shape index: {}]  }
   0x1   :  { %v1333_v0 = vld [vmem:[%s1837_s1 + $0x10] sm:$0xff]  ;;  %v1332_v1 = vld [vmem:[%s1837_s1 + $0x8] sm:$0xff]  ;;  %v1331_v2 = vld [vmem:[%s1837_s1] sm:$0xff] }
   0x2   :  { %500 = vmatpush.bf16.msra.mxu0 %v1333_v0  ;;  %1334 = vmatpush.bf16.msra.mxu1 %v1333_v0  ;;  %v1299_v3 = vld [vmem:[%s1840_s0] sm:$0xff]  ;;  %v1300_v7 = vld [vmem:[%s1840_s0 + $0x8] sm:$0xff]  ;;  %v1301_v11 = vld [vmem:[%s1840_s0 + $0x10] sm:$0xff] }
   0x3   :  { %1335 = vmatpush.bf16.msra.mxu2 %v1333_v0  ;;  %1336 = vmatpush.bf16.msra.mxu3 %v1333_v0  ;;  %v1307_v4 = vld [vmem:[%s1840_s0 + $0x40] sm:$0xff]  ;;  %v1308_v8 = vld [vmem:[%s1840_s0 + $0x48] sm:$0xff]  ;;  %v1309_v12 = vld [vmem:[%s1840_s0 + $0x50] sm:$0xff] }
   0x4   :  { %v1315_v5 = vld [vmem:[%s1840_s0 + $0x80] sm:$0xff]  ;;  %v1316_v9 = vld [vmem:[%s1840_s0 + $0x88] sm:$0xff]  ;;  %v1317_v13 = vld [vmem:[%s1840_s0 + $0x90] sm:$0xff] }
   0x5   :  { %v1323_v6 = vld [vmem:[%s1840_s0 + $0xc0] sm:$0xff]  ;;  %v1324_v10 = vld [vmem:[%s1840_s0 + $0xc8] sm:$0xff]  ;;  %v1325_v14 = vld [vmem:[%s1840_s0 + $0xd0] sm:$0xff] }
   0x6   :  { %501 = vmatpush.bf16.msra.mxu0 %v1332_v1  ;;  %1337 = vmatpush.bf16.msra.mxu1 %v1332_v1  ;;  %v1302_v15 = vld [vmem:[%s1840_s0 + $0x18] sm:$0xff]  ;;  %v1303_v19 = vld [vmem:[%s1840_s0 + $0x20] sm:$0xff]  ;;  %v1304_v23 = vld [vmem:[%s1840_s0 + $0x28] sm:$0xff] }
   0x7   :  { %1338 = vmatpush.bf16.msra.mxu2 %v1332_v1  ;;  %1339 = vmatpush.bf16.msra.mxu3 %v1332_v1  ;;  %v1310_v16 = vld [vmem:[%s1840_s0 + $0x58] sm:$0xff]  ;;  %v1311_v20 = vld [vmem:[%s1840_s0 + $0x60] sm:$0xff]  ;;  %v1312_v24 = vld [vmem:[%s1840_s0 + $0x68] sm:$0xff] }
   0x8   :  { %v1318_v17 = vld [vmem:[%s1840_s0 + $0x98] sm:$0xff]  ;;  %v1319_v21 = vld [vmem:[%s1840_s0 + $0xa0] sm:$0xff]  ;;  %v1320_v25 = vld [vmem:[%s1840_s0 + $0xa8] sm:$0xff] }
   0x9   :  { %v1326_v18 = vld [vmem:[%s1840_s0 + $0xd8] sm:$0xff]  ;;  %v1327_v22 = vld [vmem:[%s1840_s0 + $0xe0] sm:$0xff]  ;;  %v1328_v26 = vld [vmem:[%s1840_s0 + $0xe8] sm:$0xff] }
   0xa   :  { %502 = vmatpush.bf16.msra.mxu0 %v1331_v2  ;;  %1340 = vmatpush.bf16.msra.mxu1 %v1331_v2  ;;  %v1305_v27 = vld [vmem:[%s1840_s0 + $0x30] sm:$0xff]  ;;  %v1306_v31 = vld [vmem:[%s1840_s0 + $0x38] sm:$0xff]  ;;  %v1510_v35 = vld [vmem:[%s1838_s2] ss:$0 sm:$0xff] }
   0xb   :  { %1341 = vmatpush.bf16.msra.mxu2 %v1331_v2  ;;  %1342 = vmatpush.bf16.msra.mxu3 %v1331_v2  ;;  %v1313_v28 = vld [vmem:[%s1840_s0 + $0x70] sm:$0xff]  ;;  %v1314_v32 = vld [vmem:[%s1840_s0 + $0x78] sm:$0xff]  ;;  %v1515_v36 = vld [vmem:[%s1839_s3] ss:$0 sm:$0xff] }
   0xc   :  { %v1321_v29 = vld [vmem:[%s1840_s0 + $0xb0] sm:$0xff]  ;;  %v1322_v33 = vld [vmem:[%s1840_s0 + $0xb8] sm:$0xff] }
   0xd   :  { %1267 = vmatmul.msk.bf16.vlgmr.msra.gmra.mxu0 %vm398_vm0, %v1299_v3  ;;  %1275 = vmatmul.msk.bf16.vlgmr.msra.gmra.mxu1 %vm398_vm0, %v1307_v4  ;;  %v1329_v30 = vld [vmem:[%s1840_s0 + $0xf0] sm:$0xff]  ;;  %v1330_v34 = vld [vmem:[%s1840_s0 + $0xf8] sm:$0xff] }
   0xe   :  { %1283 = vmatmul.msk.bf16.vlgmr.msra.gmra.mxu2 %vm398_vm0, %v1315_v5  ;;  %1291 = vmatmul.msk.bf16.vlgmr.msra.gmra.mxu3 %vm398_vm0, %v1323_v6 }
  0x1d   :  { %1268 = vmatmul.msk.bf16.gmra.mxu0 %vm398_vm0, %v1300_v7  ;;  %1276 = vmatmul.msk.bf16.gmra.mxu1 %vm398_vm0, %v1308_v8 }
  0x1e   :  { %1284 = vmatmul.msk.bf16.gmra.mxu2 %vm398_vm0, %v1316_v9  ;;  %1292 = vmatmul.msk.bf16.gmra.mxu3 %vm398_vm0, %v1324_v10 }
  0x2d   :  { %1269 = vmatmul.msk.bf16.gmra.mxu0 %vm398_vm0, %v1301_v11  ;;  %1277 = vmatmul.msk.bf16.gmra.mxu1 %vm398_vm0, %v1309_v12 }
  0x2e   :  { %1285 = vmatmul.msk.bf16.gmra.mxu2 %vm398_vm0, %v1317_v13  ;;  %1293 = vmatmul.msk.bf16.gmra.mxu3 %vm398_vm0, %v1325_v14 }
  0x3d   :  { %1270 = vmatmul.msk.bf16.gmra.mxu0 %vm398_vm0, %v1302_v15  ;;  %1278 = vmatmul.msk.bf16.gmra.mxu1 %vm398_vm0, %v1310_v16 }
  0x3e   :  { %1286 = vmatmul.msk.bf16.gmra.mxu2 %vm398_vm0, %v1318_v17  ;;  %1294 = vmatmul.msk.bf16.gmra.mxu3 %vm398_vm0, %v1326_v18 }
  0x4d   :  { %1271 = vmatmul.msk.bf16.gmra.mxu0 %vm398_vm0, %v1303_v19  ;;  %1279 = vmatmul.msk.bf16.gmra.mxu1 %vm398_vm0, %v1311_v20 }
  0x4e   :  { %1287 = vmatmul.msk.bf16.gmra.mxu2 %vm398_vm0, %v1319_v21  ;;  %1295 = vmatmul.msk.bf16.gmra.mxu3 %vm398_vm0, %v1327_v22 }
  0x5d   :  { %1272 = vmatmul.msk.bf16.gmra.mxu0 %vm398_vm0, %v1304_v23  ;;  %1280 = vmatmul.msk.bf16.gmra.mxu1 %vm398_vm0, %v1312_v24 }
  0x5e   :  { %1288 = vmatmul.msk.bf16.gmra.mxu2 %vm398_vm0, %v1320_v25  ;;  %1296 = vmatmul.msk.bf16.gmra.mxu3 %vm398_vm0, %v1328_v26 }
  0x6d   :  { %1273 = vmatmul.msk.bf16.gmra.mxu0 %vm398_vm0, %v1305_v27  ;;  %1281 = vmatmul.msk.bf16.gmra.mxu1 %vm398_vm0, %v1313_v28 }
  0x6e   :  { %1289 = vmatmul.msk.bf16.gmra.mxu2 %vm398_vm0, %v1321_v29  ;;  %1297 = vmatmul.msk.bf16.gmra.mxu3 %vm398_vm0, %v1329_v30 }
  0x7d   :  { %1274 = vmatmul.msk.bf16.gmra.mxu0 %vm398_vm0, %v1306_v31  ;;  %1282 = vmatmul.msk.bf16.gmra.mxu1 %vm398_vm0, %v1314_v32 }
  0x7e   :  { %1290 = vmatmul.msk.bf16.gmra.mxu2 %vm398_vm0, %v1322_v33  ;;  %1298 = vmatmul.msk.bf16.gmra.mxu3 %vm398_vm0, %v1330_v34 }
  0x8a   :  { %v504_v37 = vpop.f32.mrf.mxu0  ;;  %v544_v38 = vpop.f32.mrf.mxu1 }
  0x8b   :  { %v863_v39 = vmul.f32 %v1510_v35, %v504_v37  ;;  %v879_v40 = vmul.f32 %v1510_v35, %v544_v38 }
  0x8d   :  { %v931_v41 = vadd.f32 %v1515_v36, %v863_v39  ;;  %v947_v42 = vadd.f32 %v1515_v36, %v879_v40 }
  0x8f   :  { %v995_v43 = vmax.f32 %v931_v41, 0.0  ;;  %v1011_v44 = vmax.f32 %v947_v42, 0.0 }
  0x91   :  { %1059 = vst [vmem:[%s1841_s4] sm:$0xff] %v995_v43  ;;  %v584_v45 = vpop.f32.mrf.mxu2  ;;  %v624_v46 = vpop.f32.mrf.mxu3 }
  0x92   :  { %1075 = vst [vmem:[%s1841_s4 + $0x80] sm:$0xff] %v1011_v44  ;;  %v895_v47 = vmul.f32 %v1510_v35, %v584_v45  ;;  %v911_v48 = vmul.f32 %v1510_v35, %v624_v46  ;;  %v506_v49 = vpop.f32.mrf.mxu0  ;;  %v546_v50 = vpop.f32.mrf.mxu1 }
  0x93   :  { %v864_v51 = vmul.f32 %v1510_v35, %v506_v49  ;;  %v880_v52 = vmul.f32 %v1510_v35, %v546_v50 }
  0x94   :  { %v963_v53 = vadd.f32 %v1515_v36, %v895_v47  ;;  %v979_v54 = vadd.f32 %v1515_v36, %v911_v48 }
  0x95   :  { %v932_v55 = vadd.f32 %v1515_v36, %v864_v51  ;;  %v948_v56 = vadd.f32 %v1515_v36, %v880_v52 }
  0x96   :  { %v1027_v57 = vmax.f32 %v963_v53, 0.0  ;;  %v1043_v58 = vmax.f32 %v979_v54, 0.0 }
  0x97   :  { %v996_v59 = vmax.f32 %v932_v55, 0.0  ;;  %v1012_v60 = vmax.f32 %v948_v56, 0.0 }
  0x98   :  { %1091 = vst [vmem:[%s1841_s4 + $0x100] sm:$0xff] %v1027_v57 }
  0x99   :  { %1107 = vst [vmem:[%s1841_s4 + $0x180] sm:$0xff] %v1043_v58  ;;  %v586_v61 = vpop.f32.mrf.mxu2  ;;  %v626_v62 = vpop.f32.mrf.mxu3 }
  0x9a   :  { %1060 = vst [vmem:[%s1841_s4 + $0x8] sm:$0xff] %v996_v59  ;;  %v896_v63 = vmul.f32 %v1510_v35, %v586_v61  ;;  %v912_v0 = vmul.f32 %v1510_v35, %v626_v62  ;;  %v509_v1 = vpop.f32.mrf.mxu0  ;;  %v549_v2 = vpop.f32.mrf.mxu1 }
  0x9b   :  { %1076 = vst [vmem:[%s1841_s4 + $0x88] sm:$0xff] %v1012_v60  ;;  %v865_v3 = vmul.f32 %v1510_v35, %v509_v1  ;;  %v881_v4 = vmul.f32 %v1510_v35, %v549_v2 }
  0x9c   :  { %v964_v5 = vadd.f32 %v1515_v36, %v896_v63  ;;  %v980_v6 = vadd.f32 %v1515_v36, %v912_v0 }
  0x9d   :  { %v933_v7 = vadd.f32 %v1515_v36, %v865_v3  ;;  %v949_v8 = vadd.f32 %v1515_v36, %v881_v4 }
  0x9e   :  { %v1028_v9 = vmax.f32 %v964_v5, 0.0  ;;  %v1044_v10 = vmax.f32 %v980_v6, 0.0 }
  0x9f   :  { %v997_v11 = vmax.f32 %v933_v7, 0.0  ;;  %v1013_v12 = vmax.f32 %v949_v8, 0.0 }
  0xa0   :  { %1092 = vst [vmem:[%s1841_s4 + $0x108] sm:$0xff] %v1028_v9 }
  0xa1   :  { %1108 = vst [vmem:[%s1841_s4 + $0x188] sm:$0xff] %v1044_v10  ;;  %v589_v13 = vpop.f32.mrf.mxu2  ;;  %v629_v14 = vpop.f32.mrf.mxu3 }
  0xa2   :  { %1061 = vst [vmem:[%s1841_s4 + $0x10] sm:$0xff] %v997_v11  ;;  %v897_v15 = vmul.f32 %v1510_v35, %v589_v13  ;;  %v913_v16 = vmul.f32 %v1510_v35, %v629_v14  ;;  %v511_v17 = vpop.f32.mrf.mxu0  ;;  %v551_v18 = vpop.f32.mrf.mxu1 }
  0xa3   :  { %1077 = vst [vmem:[%s1841_s4 + $0x90] sm:$0xff] %v1013_v12  ;;  %v866_v19 = vmul.f32 %v1510_v35, %v511_v17  ;;  %v882_v20 = vmul.f32 %v1510_v35, %v551_v18 }
  0xa4   :  { %v965_v21 = vadd.f32 %v1515_v36, %v897_v15  ;;  %v981_v22 = vadd.f32 %v1515_v36, %v913_v16 }
  0xa5   :  { %v934_v23 = vadd.f32 %v1515_v36, %v866_v19  ;;  %v950_v24 = vadd.f32 %v1515_v36, %v882_v20 }
  0xa6   :  { %v1029_v25 = vmax.f32 %v965_v21, 0.0  ;;  %v1045_v26 = vmax.f32 %v981_v22, 0.0 }
  0xa7   :  { %v998_v27 = vmax.f32 %v934_v23, 0.0  ;;  %v1014_v28 = vmax.f32 %v950_v24, 0.0 }
  0xa8   :  { %1093 = vst [vmem:[%s1841_s4 + $0x110] sm:$0xff] %v1029_v25 }
  0xa9   :  { %1109 = vst [vmem:[%s1841_s4 + $0x190] sm:$0xff] %v1045_v26  ;;  %v591_v29 = vpop.f32.mrf.mxu2  ;;  %v631_v30 = vpop.f32.mrf.mxu3 }
  0xaa   :  { %1062 = vst [vmem:[%s1841_s4 + $0x18] sm:$0xff] %v998_v27  ;;  %v898_v31 = vmul.f32 %v1510_v35, %v591_v29  ;;  %v914_v32 = vmul.f32 %v1510_v35, %v631_v30  ;;  %v514_v33 = vpop.f32.mrf.mxu0  ;;  %v554_v34 = vpop.f32.mrf.mxu1 }
  0xab   :  { %1078 = vst [vmem:[%s1841_s4 + $0x98] sm:$0xff] %v1014_v28  ;;  %v867_v37 = vmul.f32 %v1510_v35, %v514_v33  ;;  %v883_v38 = vmul.f32 %v1510_v35, %v554_v34 }
  0xac   :  { %v966_v39 = vadd.f32 %v1515_v36, %v898_v31  ;;  %v982_v40 = vadd.f32 %v1515_v36, %v914_v32 }
  0xad   :  { %v935_v41 = vadd.f32 %v1515_v36, %v867_v37  ;;  %v951_v42 = vadd.f32 %v1515_v36, %v883_v38 }
  0xae   :  { %v1030_v43 = vmax.f32 %v966_v39, 0.0  ;;  %v1046_v44 = vmax.f32 %v982_v40, 0.0 }
  0xaf   :  { %v999_v45 = vmax.f32 %v935_v41, 0.0  ;;  %v1015_v46 = vmax.f32 %v951_v42, 0.0 }
  0xb0   :  { %1094 = vst [vmem:[%s1841_s4 + $0x118] sm:$0xff] %v1030_v43 }
  0xb1   :  { %1110 = vst [vmem:[%s1841_s4 + $0x198] sm:$0xff] %v1046_v44  ;;  %v594_v47 = vpop.f32.mrf.mxu2  ;;  %v634_v48 = vpop.f32.mrf.mxu3 }
  0xb2   :  { %1063 = vst [vmem:[%s1841_s4 + $0x20] sm:$0xff] %v999_v45  ;;  %v899_v49 = vmul.f32 %v1510_v35, %v594_v47  ;;  %v915_v50 = vmul.f32 %v1510_v35, %v634_v48  ;;  %v516_v51 = vpop.f32.mrf.mxu0  ;;  %v556_v52 = vpop.f32.mrf.mxu1 }
  0xb3   :  { %1079 = vst [vmem:[%s1841_s4 + $0xa0] sm:$0xff] %v1015_v46  ;;  %v868_v53 = vmul.f32 %v1510_v35, %v516_v51  ;;  %v884_v54 = vmul.f32 %v1510_v35, %v556_v52 }
  0xb4   :  { %v967_v55 = vadd.f32 %v1515_v36, %v899_v49  ;;  %v983_v56 = vadd.f32 %v1515_v36, %v915_v50 }
  0xb5   :  { %v936_v57 = vadd.f32 %v1515_v36, %v868_v53  ;;  %v952_v58 = vadd.f32 %v1515_v36, %v884_v54 }
  0xb6   :  { %v1031_v59 = vmax.f32 %v967_v55, 0.0  ;;  %v1047_v60 = vmax.f32 %v983_v56, 0.0 }
  0xb7   :  { %v1000_v61 = vmax.f32 %v936_v57, 0.0  ;;  %v1016_v62 = vmax.f32 %v952_v58, 0.0 }
  0xb8   :  { %1095 = vst [vmem:[%s1841_s4 + $0x120] sm:$0xff] %v1031_v59 }
  0xb9   :  { %1111 = vst [vmem:[%s1841_s4 + $0x1a0] sm:$0xff] %v1047_v60  ;;  %v596_v63 = vpop.f32.mrf.mxu2  ;;  %v636_v0 = vpop.f32.mrf.mxu3 }
  0xba   :  { %1064 = vst [vmem:[%s1841_s4 + $0x28] sm:$0xff] %v1000_v61  ;;  %v900_v1 = vmul.f32 %v1510_v35, %v596_v63  ;;  %v916_v2 = vmul.f32 %v1510_v35, %v636_v0  ;;  %v519_v3 = vpop.f32.mrf.mxu0  ;;  %v559_v4 = vpop.f32.mrf.mxu1 }
  0xbb   :  { %1080 = vst [vmem:[%s1841_s4 + $0xa8] sm:$0xff] %v1016_v62  ;;  %v869_v5 = vmul.f32 %v1510_v35, %v519_v3  ;;  %v885_v6 = vmul.f32 %v1510_v35, %v559_v4 }
  0xbc   :  { %v968_v7 = vadd.f32 %v1515_v36, %v900_v1  ;;  %v984_v8 = vadd.f32 %v1515_v36, %v916_v2 }
  0xbd   :  { %v937_v9 = vadd.f32 %v1515_v36, %v869_v5  ;;  %v953_v10 = vadd.f32 %v1515_v36, %v885_v6 }
  0xbe   :  { %v1032_v11 = vmax.f32 %v968_v7, 0.0  ;;  %v1048_v12 = vmax.f32 %v984_v8, 0.0 }
  0xbf   :  { %v1001_v13 = vmax.f32 %v937_v9, 0.0  ;;  %v1017_v14 = vmax.f32 %v953_v10, 0.0 }
  0xc0   :  { %1096 = vst [vmem:[%s1841_s4 + $0x128] sm:$0xff] %v1032_v11 }
  0xc1   :  { %1112 = vst [vmem:[%s1841_s4 + $0x1a8] sm:$0xff] %v1048_v12  ;;  %v599_v15 = vpop.f32.mrf.mxu2  ;;  %v639_v16 = vpop.f32.mrf.mxu3 }
  0xc2   :  { %1065 = vst [vmem:[%s1841_s4 + $0x30] sm:$0xff] %v1001_v13  ;;  %v901_v17 = vmul.f32 %v1510_v35, %v599_v15  ;;  %v917_v18 = vmul.f32 %v1510_v35, %v639_v16  ;;  %v521_v19 = vpop.f32.mrf.mxu0  ;;  %v561_v20 = vpop.f32.mrf.mxu1 }
  0xc3   :  { %1081 = vst [vmem:[%s1841_s4 + $0xb0] sm:$0xff] %v1017_v14  ;;  %v870_v21 = vmul.f32 %v1510_v35, %v521_v19  ;;  %v886_v22 = vmul.f32 %v1510_v35, %v561_v20 }
  0xc4   :  { %v969_v23 = vadd.f32 %v1515_v36, %v901_v17  ;;  %v985_v24 = vadd.f32 %v1515_v36, %v917_v18 }
  0xc5   :  { %v938_v25 = vadd.f32 %v1515_v36, %v870_v21  ;;  %v954_v26 = vadd.f32 %v1515_v36, %v886_v22 }
  0xc6   :  { %v1033_v27 = vmax.f32 %v969_v23, 0.0  ;;  %v1049_v28 = vmax.f32 %v985_v24, 0.0 }
  0xc7   :  { %v1002_v29 = vmax.f32 %v938_v25, 0.0  ;;  %v1018_v30 = vmax.f32 %v954_v26, 0.0 }
  0xc8   :  { %1097 = vst [vmem:[%s1841_s4 + $0x130] sm:$0xff] %v1033_v27 }
  0xc9   :  { %1113 = vst [vmem:[%s1841_s4 + $0x1b0] sm:$0xff] %v1049_v28  ;;  %v601_v31 = vpop.f32.mrf.mxu2  ;;  %v641_v32 = vpop.f32.mrf.mxu3 }
  0xca   :  { %1066 = vst [vmem:[%s1841_s4 + $0x38] sm:$0xff] %v1002_v29  ;;  %v902_v33 = vmul.f32 %v1510_v35, %v601_v31  ;;  %v918_v34 = vmul.f32 %v1510_v35, %v641_v32  ;;  %v524_v37 = vpop.f32.mrf.mxu0  ;;  %v564_v38 = vpop.f32.mrf.mxu1 }
  0xcb   :  { %1082 = vst [vmem:[%s1841_s4 + $0xb8] sm:$0xff] %v1018_v30  ;;  %v871_v39 = vmul.f32 %v1510_v35, %v524_v37  ;;  %v887_v40 = vmul.f32 %v1510_v35, %v564_v38 }
  0xcc   :  { %v970_v41 = vadd.f32 %v1515_v36, %v902_v33  ;;  %v986_v42 = vadd.f32 %v1515_v36, %v918_v34 }
  0xcd   :  { %v939_v43 = vadd.f32 %v1515_v36, %v871_v39  ;;  %v955_v44 = vadd.f32 %v1515_v36, %v887_v40 }
  0xce   :  { %v1034_v45 = vmax.f32 %v970_v41, 0.0  ;;  %v1050_v46 = vmax.f32 %v986_v42, 0.0 }
  0xcf   :  { %v1003_v47 = vmax.f32 %v939_v43, 0.0  ;;  %v1019_v48 = vmax.f32 %v955_v44, 0.0 }
  0xd0   :  { %1098 = vst [vmem:[%s1841_s4 + $0x138] sm:$0xff] %v1034_v45 }
  0xd1   :  { %1114 = vst [vmem:[%s1841_s4 + $0x1b8] sm:$0xff] %v1050_v46  ;;  %v604_v49 = vpop.f32.mrf.mxu2  ;;  %v644_v50 = vpop.f32.mrf.mxu3 }
  0xd2   :  { %1067 = vst [vmem:[%s1841_s4 + $0x40] sm:$0xff] %v1003_v47  ;;  %v903_v51 = vmul.f32 %v1510_v35, %v604_v49  ;;  %v919_v52 = vmul.f32 %v1510_v35, %v644_v50  ;;  %v526_v53 = vpop.f32.mrf.mxu0  ;;  %v566_v54 = vpop.f32.mrf.mxu1 }
  0xd3   :  { %1083 = vst [vmem:[%s1841_s4 + $0xc0] sm:$0xff] %v1019_v48  ;;  %v872_v55 = vmul.f32 %v1510_v35, %v526_v53  ;;  %v888_v56 = vmul.f32 %v1510_v35, %v566_v54 }
  0xd4   :  { %v971_v57 = vadd.f32 %v1515_v36, %v903_v51  ;;  %v987_v58 = vadd.f32 %v1515_v36, %v919_v52 }
  0xd5   :  { %v940_v59 = vadd.f32 %v1515_v36, %v872_v55  ;;  %v956_v60 = vadd.f32 %v1515_v36, %v888_v56 }
  0xd6   :  { %v1035_v61 = vmax.f32 %v971_v57, 0.0  ;;  %v1051_v62 = vmax.f32 %v987_v58, 0.0 }
  0xd7   :  { %v1004_v63 = vmax.f32 %v940_v59, 0.0  ;;  %v1020_v0 = vmax.f32 %v956_v60, 0.0 }
  0xd8   :  { %1099 = vst [vmem:[%s1841_s4 + $0x140] sm:$0xff] %v1035_v61 }
  0xd9   :  { %1115 = vst [vmem:[%s1841_s4 + $0x1c0] sm:$0xff] %v1051_v62  ;;  %v606_v1 = vpop.f32.mrf.mxu2  ;;  %v646_v2 = vpop.f32.mrf.mxu3 }
  0xda   :  { %1068 = vst [vmem:[%s1841_s4 + $0x48] sm:$0xff] %v1004_v63  ;;  %v904_v3 = vmul.f32 %v1510_v35, %v606_v1  ;;  %v920_v4 = vmul.f32 %v1510_v35, %v646_v2  ;;  %v529_v5 = vpop.f32.mrf.mxu0  ;;  %v569_v6 = vpop.f32.mrf.mxu1 }
  0xdb   :  { %1084 = vst [vmem:[%s1841_s4 + $0xc8] sm:$0xff] %v1020_v0  ;;  %v873_v7 = vmul.f32 %v1510_v35, %v529_v5  ;;  %v889_v8 = vmul.f32 %v1510_v35, %v569_v6 }
  0xdc   :  { %v972_v9 = vadd.f32 %v1515_v36, %v904_v3  ;;  %v988_v10 = vadd.f32 %v1515_v36, %v920_v4 }
  0xdd   :  { %v941_v11 = vadd.f32 %v1515_v36, %v873_v7  ;;  %v957_v12 = vadd.f32 %v1515_v36, %v889_v8 }
  0xde   :  { %v1036_v13 = vmax.f32 %v972_v9, 0.0  ;;  %v1052_v14 = vmax.f32 %v988_v10, 0.0 }
  0xdf   :  { %v1005_v15 = vmax.f32 %v941_v11, 0.0  ;;  %v1021_v16 = vmax.f32 %v957_v12, 0.0 }
  0xe0   :  { %1100 = vst [vmem:[%s1841_s4 + $0x148] sm:$0xff] %v1036_v13 }
  0xe1   :  { %1116 = vst [vmem:[%s1841_s4 + $0x1c8] sm:$0xff] %v1052_v14  ;;  %v609_v17 = vpop.f32.mrf.mxu2  ;;  %v649_v18 = vpop.f32.mrf.mxu3 }
  0xe2   :  { %1069 = vst [vmem:[%s1841_s4 + $0x50] sm:$0xff] %v1005_v15  ;;  %v905_v19 = vmul.f32 %v1510_v35, %v609_v17  ;;  %v921_v20 = vmul.f32 %v1510_v35, %v649_v18  ;;  %v531_v21 = vpop.f32.mrf.mxu0  ;;  %v571_v22 = vpop.f32.mrf.mxu1 }
  0xe3   :  { %1085 = vst [vmem:[%s1841_s4 + $0xd0] sm:$0xff] %v1021_v16  ;;  %v874_v23 = vmul.f32 %v1510_v35, %v531_v21  ;;  %v890_v24 = vmul.f32 %v1510_v35, %v571_v22 }
  0xe4   :  { %v973_v25 = vadd.f32 %v1515_v36, %v905_v19  ;;  %v989_v26 = vadd.f32 %v1515_v36, %v921_v20 }
  0xe5   :  { %v942_v27 = vadd.f32 %v1515_v36, %v874_v23  ;;  %v958_v28 = vadd.f32 %v1515_v36, %v890_v24 }
  0xe6   :  { %v1037_v29 = vmax.f32 %v973_v25, 0.0  ;;  %v1053_v30 = vmax.f32 %v989_v26, 0.0 }
  0xe7   :  { %v1006_v31 = vmax.f32 %v942_v27, 0.0  ;;  %v1022_v32 = vmax.f32 %v958_v28, 0.0 }
  0xe8   :  { %1101 = vst [vmem:[%s1841_s4 + $0x150] sm:$0xff] %v1037_v29 }
  0xe9   :  { %1117 = vst [vmem:[%s1841_s4 + $0x1d0] sm:$0xff] %v1053_v30  ;;  %v611_v33 = vpop.f32.mrf.mxu2  ;;  %v651_v34 = vpop.f32.mrf.mxu3 }
  0xea   :  { %1070 = vst [vmem:[%s1841_s4 + $0x58] sm:$0xff] %v1006_v31  ;;  %v906_v37 = vmul.f32 %v1510_v35, %v611_v33  ;;  %v922_v38 = vmul.f32 %v1510_v35, %v651_v34  ;;  %v534_v39 = vpop.f32.mrf.mxu0  ;;  %v574_v40 = vpop.f32.mrf.mxu1 }
  0xeb   :  { %1086 = vst [vmem:[%s1841_s4 + $0xd8] sm:$0xff] %v1022_v32  ;;  %v875_v41 = vmul.f32 %v1510_v35, %v534_v39  ;;  %v891_v42 = vmul.f32 %v1510_v35, %v574_v40 }
  0xec   :  { %v974_v43 = vadd.f32 %v1515_v36, %v906_v37  ;;  %v990_v44 = vadd.f32 %v1515_v36, %v922_v38 }
  0xed   :  { %v943_v45 = vadd.f32 %v1515_v36, %v875_v41  ;;  %v959_v46 = vadd.f32 %v1515_v36, %v891_v42 }
  0xee   :  { %v1038_v47 = vmax.f32 %v974_v43, 0.0  ;;  %v1054_v48 = vmax.f32 %v990_v44, 0.0 }
  0xef   :  { %v1007_v49 = vmax.f32 %v943_v45, 0.0  ;;  %v1023_v50 = vmax.f32 %v959_v46, 0.0 }
  0xf0   :  { %1102 = vst [vmem:[%s1841_s4 + $0x158] sm:$0xff] %v1038_v47 }
  0xf1   :  { %1118 = vst [vmem:[%s1841_s4 + $0x1d8] sm:$0xff] %v1054_v48  ;;  %v614_v51 = vpop.f32.mrf.mxu2  ;;  %v654_v52 = vpop.f32.mrf.mxu3 }
  0xf2   :  { %1071 = vst [vmem:[%s1841_s4 + $0x60] sm:$0xff] %v1007_v49  ;;  %v907_v53 = vmul.f32 %v1510_v35, %v614_v51  ;;  %v923_v54 = vmul.f32 %v1510_v35, %v654_v52  ;;  %v536_v55 = vpop.f32.mrf.mxu0  ;;  %v576_v56 = vpop.f32.mrf.mxu1 }
  0xf3   :  { %1087 = vst [vmem:[%s1841_s4 + $0xe0] sm:$0xff] %v1023_v50  ;;  %v876_v57 = vmul.f32 %v1510_v35, %v536_v55  ;;  %v892_v58 = vmul.f32 %v1510_v35, %v576_v56 }
  0xf4   :  { %v975_v59 = vadd.f32 %v1515_v36, %v907_v53  ;;  %v991_v60 = vadd.f32 %v1515_v36, %v923_v54 }
  0xf5   :  { %v944_v61 = vadd.f32 %v1515_v36, %v876_v57  ;;  %v960_v62 = vadd.f32 %v1515_v36, %v892_v58 }
  0xf6   :  { %v1039_v63 = vmax.f32 %v975_v59, 0.0  ;;  %v1055_v0 = vmax.f32 %v991_v60, 0.0 }
  0xf7   :  { %v1008_v1 = vmax.f32 %v944_v61, 0.0  ;;  %v1024_v2 = vmax.f32 %v960_v62, 0.0 }
  0xf8   :  { %1103 = vst [vmem:[%s1841_s4 + $0x160] sm:$0xff] %v1039_v63 }
  0xf9   :  { %1119 = vst [vmem:[%s1841_s4 + $0x1e0] sm:$0xff] %v1055_v0  ;;  %v616_v3 = vpop.f32.mrf.mxu2  ;;  %v656_v4 = vpop.f32.mrf.mxu3 }
  0xfa   :  { %1072 = vst [vmem:[%s1841_s4 + $0x68] sm:$0xff] %v1008_v1  ;;  %v908_v5 = vmul.f32 %v1510_v35, %v616_v3  ;;  %v924_v6 = vmul.f32 %v1510_v35, %v656_v4  ;;  %v539_v7 = vpop.f32.mrf.mxu0  ;;  %v579_v8 = vpop.f32.mrf.mxu1 }
  0xfb   :  { %1088 = vst [vmem:[%s1841_s4 + $0xe8] sm:$0xff] %v1024_v2  ;;  %v877_v9 = vmul.f32 %v1510_v35, %v539_v7  ;;  %v893_v10 = vmul.f32 %v1510_v35, %v579_v8 }
  0xfc   :  { %v976_v11 = vadd.f32 %v1515_v36, %v908_v5  ;;  %v992_v12 = vadd.f32 %v1515_v36, %v924_v6 }
  0xfd   :  { %v945_v13 = vadd.f32 %v1515_v36, %v877_v9  ;;  %v961_v14 = vadd.f32 %v1515_v36, %v893_v10 }
  0xfe   :  { %v1040_v15 = vmax.f32 %v976_v11, 0.0  ;;  %v1056_v16 = vmax.f32 %v992_v12, 0.0 }
  0xff   :  { %v1009_v17 = vmax.f32 %v945_v13, 0.0  ;;  %v1025_v18 = vmax.f32 %v961_v14, 0.0 }
 0x100   :  { %1104 = vst [vmem:[%s1841_s4 + $0x168] sm:$0xff] %v1040_v15 }
 0x101   :  { %1120 = vst [vmem:[%s1841_s4 + $0x1e8] sm:$0xff] %v1056_v16  ;;  %v619_v19 = vpop.f32.mrf.mxu2  ;;  %v659_v20 = vpop.f32.mrf.mxu3 }
 0x102   :  { %1073 = vst [vmem:[%s1841_s4 + $0x70] sm:$0xff] %v1009_v17  ;;  %v909_v21 = vmul.f32 %v1510_v35, %v619_v19  ;;  %v925_v22 = vmul.f32 %v1510_v35, %v659_v20  ;;  %v541_v23 = vpop.f32.mrf.mxu0  ;;  %v581_v24 = vpop.f32.mrf.mxu1 }
 0x103   :  { %1089 = vst [vmem:[%s1841_s4 + $0xf0] sm:$0xff] %v1025_v18  ;;  %v878_v25 = vmul.f32 %v1510_v35, %v541_v23  ;;  %v894_v26 = vmul.f32 %v1510_v35, %v581_v24 }
 0x104   :  { %v977_v27 = vadd.f32 %v1515_v36, %v909_v21  ;;  %v993_v28 = vadd.f32 %v1515_v36, %v925_v22 }
 0x105   :  { %v946_v29 = vadd.f32 %v1515_v36, %v878_v25  ;;  %v962_v30 = vadd.f32 %v1515_v36, %v894_v26 }
 0x106   :  { %v1041_v31 = vmax.f32 %v977_v27, 0.0  ;;  %v1057_v32 = vmax.f32 %v993_v28, 0.0 }
 0x107   :  { %v1010_v33 = vmax.f32 %v946_v29, 0.0  ;;  %v1026_v34 = vmax.f32 %v962_v30, 0.0 }
 0x108   :  { %1105 = vst [vmem:[%s1841_s4 + $0x170] sm:$0xff] %v1041_v31 }
 0x109   :  { %1121 = vst [vmem:[%s1841_s4 + $0x1f0] sm:$0xff] %v1057_v32  ;;  %v621_v37 = vpop.f32.mrf.mxu2  ;;  %v661_v38 = vpop.f32.mrf.mxu3 }
 0x10a   :  { %1074 = vst [vmem:[%s1841_s4 + $0x78] sm:$0xff] %v1010_v33  ;;  %v910_v39 = vmul.f32 %v1510_v35, %v621_v37  ;;  %v926_v40 = vmul.f32 %v1510_v35, %v661_v38 }
 0x10b   :  { %1090 = vst [vmem:[%s1841_s4 + $0xf8] sm:$0xff] %v1026_v34 }
 0x10c   :  { %v978_v41 = vadd.f32 %v1515_v36, %v910_v39  ;;  %v994_v42 = vadd.f32 %v1515_v36, %v926_v40 }
 0x10e   :  { %v1042_v43 = vmax.f32 %v978_v41, 0.0  ;;  %v1058_v44 = vmax.f32 %v994_v42, 0.0 }
 0x110   :  { %1106 = vst [vmem:[%s1841_s4 + $0x178] sm:$0xff] %v1042_v43 }
 0x111   :  { %1122 = vst [vmem:[%s1841_s4 + $0x1f8] sm:$0xff] %v1058_v44 }

</bundles_post_ra>
